<compile_context>
chip_gen: v5e
topology: v5e:2x2
jax: 0.10.0
libtpu: 0.0.40
codegen_flags: <defaults>
</compile_context>

<pallas_src>
import functools

import jax
import jax.numpy as jnp
from jax.experimental import pallas as pl
from jax.experimental.pallas import tpu as pltpu


def _decomp_kernel(x_ref, res_ref, mean_ref, xp_ref, *, kernel_size, pad):
    # x_ref:    (Bt, S, Dt)            input block
    # res_ref:  (Bt, S_out, Dt)        residual output block
    # mean_ref: (Bt, S_out, Dt)        moving-mean output block
    # xp_ref:   (Bt, S + 2*pad, Dt)    f32 VMEM scratch: edge-replicated series
    Bt, S, Dt = x_ref.shape
    S_out = S + 2 * pad - kernel_size + 1

    x = x_ref[...].astype(jnp.float32)

    # Build the edge-replicated padded series entirely in VMEM (no HBM pad).
    xp_ref[:, pad:pad + S, :] = x
    if pad > 0:
        xp_ref[:, 0:pad, :] = jnp.broadcast_to(x[:, 0:1, :], (Bt, pad, Dt))
        xp_ref[:, pad + S:, :] = jnp.broadcast_to(x[:, S - 1:S, :], (Bt, pad, Dt))
    xp = xp_ref[...]

    # Sliding-window sum: tree-reduce K statically shifted slices (VPU adds,
    # shorter dependency chain than a serial accumulate).
    terms = [xp[:, i:i + S_out, :] for i in range(kernel_size)]
    while len(terms) > 1:
        nxt = [terms[j] + terms[j + 1] for j in range(0, len(terms) - 1, 2)]
        if len(terms) % 2:
            nxt.append(terms[-1])
        terms = nxt
    mean = terms[0] * (1.0 / kernel_size)

    mean_ref[...] = mean.astype(mean_ref.dtype)
    # Odd kernel_size -> S_out == S, so the residual covers the full input.
    res_ref[...] = (x[:, 0:S_out, :] - mean).astype(res_ref.dtype)


def time_decomp(x, kernel_size):
    """x: (B, S, D). Returns (res, moving_mean), both (B, S, D)."""
    B, S, D = x.shape
    assert kernel_size >= 1
    # The PyTorch module only works for odd kernel_size (otherwise
    # `x - moving_mean` mixes S and S-1 length tensors and raises).
    assert kernel_size % 2 == 1, "time_decomp requires an odd kernel_size"
    pad = (kernel_size - 1) // 2
    S_out = S + 2 * pad - kernel_size + 1  # == S for odd kernel_size

    itemsize = x.dtype.itemsize
    target = 1 << 20  # ~1 MiB per input pipeline buffer

    # Feature tiling: lane-dense multiple of 128 when D allows, else full D.
    if D > 128 and D % 128 == 0:
        lanes = max(1, target // max(1, S * itemsize))
        dt = min(D, max(128, (lanes // 128) * 128))
    else:
        dt = D
    grid_d = pl.cdiv(D, dt)

    # Batch tiling: fill the ~1 MiB target per block.
    block_bytes = S * dt * itemsize
    bt = max(1, min(B, target // max(1, block_bytes)))
    grid_b = pl.cdiv(B, bt)
    # Keep >= 2 grid steps when there is enough work (double-buffered DMA
    # pipelining; v7x dual-TensorCore sharding of the parallel grid axes).
    if grid_b * grid_d == 1 and B >= 2:
        bt = pl.cdiv(B, 2)
        grid_b = pl.cdiv(B, bt)

    kernel = functools.partial(_decomp_kernel, kernel_size=kernel_size, pad=pad)

    res, mean = pl.pallas_call(
        kernel,
        out_shape=(
            jax.ShapeDtypeStruct((B, S_out, D), x.dtype),
            jax.ShapeDtypeStruct((B, S_out, D), x.dtype),
        ),
        grid_spec=pltpu.PrefetchScalarGridSpec(
            num_scalar_prefetch=0,
            grid=(grid_b, grid_d),
            in_specs=[pl.BlockSpec((bt, S, dt), lambda b, d: (b, 0, d))],
            out_specs=[
                pl.BlockSpec((bt, S_out, dt), lambda b, d: (b, 0, d)),
                pl.BlockSpec((bt, S_out, dt), lambda b, d: (b, 0, d)),
            ],
            scratch_shapes=[pltpu.VMEM((bt, S + 2 * pad, dt), jnp.float32)],
        ),
        compiler_params=pltpu.CompilerParams(
            dimension_semantics=("parallel", "parallel"),
        ),
    )(x)
    return res, mean


def _reference(x, kernel_size):
    """Pure-JAX reference mirroring the PyTorch module."""
    pad = (kernel_size - 1) // 2
    front = jnp.repeat(x[:, 0:1, :], pad, axis=1)
    end = jnp.repeat(x[:, -1:, :], pad, axis=1)
    xp = jnp.concatenate([front, x, end], axis=1).astype(jnp.float32)
    S_out = xp.shape[1] - kernel_size + 1
    mean = jnp.stack(
        [xp[:, i:i + S_out, :] for i in range(kernel_size)], axis=0
    ).mean(axis=0)
    mean = mean.astype(x.dtype)
    return x - mean, mean


if __name__ == "__main__":
    key = jax.random.PRNGKey(0)
    B, S, D = 2, 8, 32
    kernel_size = 5  # odd -> output seq length == S, as in the PyTorch usage

    x = jax.random.normal(key, (B, S, D), dtype=jnp.float32)

    res, mean = time_decomp(x, kernel_size)
    res = jax.block_until_ready(res)
    mean = jax.block_until_ready(mean)

    res_ref, mean_ref = _reference(x, kernel_size)
    assert jnp.allclose(res, res_ref, atol=1e-5, rtol=1e-5)
    assert jnp.allclose(mean, mean_ref, atol=1e-5, rtol=1e-5)

    print("KERNEL_OK")
</pallas_src>

<mosaic_0001>
module attributes {stable_mosaic.version = 11 : i64} {
  func.func @_decomp_kernel(%arg0: i32, %arg1: i32, %arg2: memref<1x8x32xf32, #tpu.memory_space<vmem>>, %arg3: memref<1x8x32xf32, #tpu.memory_space<vmem>>, %arg4: memref<1x8x32xf32, #tpu.memory_space<vmem>>, %arg5: memref<1x12x32xf32, #tpu.memory_space<vmem>>) attributes {dimension_semantics = [#tpu.dimension_semantics<parallel>, #tpu.dimension_semantics<parallel>], iteration_bounds = array<i64: 2, 1>, scalar_prefetch = 0 : i64, scratch_operands = 1 : i64, tpu.core_type = #tpu.core_type<tc>, window_params = [{transform_indices = @transform_0, window_bounds = array<i64: 1, 8, 32>}, {transform_indices = @transform_1, window_bounds = array<i64: 1, 8, 32>}, {transform_indices = @transform_2, window_bounds = array<i64: 1, 8, 32>}]} {
    %c0 = arith.constant 0 : index
    %c0_0 = arith.constant 0 : index
    %c0_1 = arith.constant 0 : index
    %0 = vector.load %arg2[%c0, %c0_0, %c0_1] : memref<1x8x32xf32, #tpu.memory_space<vmem>>, vector<1x8x32xf32>
    %c0_2 = arith.constant 0 : index
    %c2 = arith.constant 2 : index
    %c0_3 = arith.constant 0 : index
    %1 = vector.load %arg5[%c0_2, %c2, %c0_3] : memref<1x12x32xf32, #tpu.memory_space<vmem>>, vector<1x8x32xf32>
    tpu.vector_store %arg5[%c0_2, %c2, %c0_3], %0 {strides = array<i32>} : memref<1x12x32xf32, #tpu.memory_space<vmem>>, vector<1x8x32xf32>,
    %2 = vector.extract_strided_slice %0 {offsets = [0, 0, 0], sizes = [1, 1, 32], strides = [1, 1, 1]} : vector<1x8x32xf32> to vector<1x1x32xf32>
    %3 = vector.shape_cast %2 : vector<1x1x32xf32> to vector<1x1x32xf32>
    %4 = vector.broadcast %3 : vector<1x1x32xf32> to vector<1x2x32xf32>
    %c0_4 = arith.constant 0 : index
    %c0_5 = arith.constant 0 : index
    %c0_6 = arith.constant 0 : index
    %5 = vector.load %arg5[%c0_4, %c0_5, %c0_6] : memref<1x12x32xf32, #tpu.memory_space<vmem>>, vector<1x2x32xf32>
    tpu.vector_store %arg5[%c0_4, %c0_5, %c0_6], %4 {strides = array<i32>} : memref<1x12x32xf32, #tpu.memory_space<vmem>>, vector<1x2x32xf32>,
    %6 = vector.extract_strided_slice %0 {offsets = [0, 7, 0], sizes = [1, 1, 32], strides = [1, 1, 1]} : vector<1x8x32xf32> to vector<1x1x32xf32>
    %7 = vector.shape_cast %6 : vector<1x1x32xf32> to vector<1x1x32xf32>
    %8 = vector.broadcast %7 : vector<1x1x32xf32> to vector<1x2x32xf32>
    %c0_7 = arith.constant 0 : index
    %c10 = arith.constant 10 : index
    %c0_8 = arith.constant 0 : index
    %9 = vector.load %arg5[%c0_7, %c10, %c0_8] : memref<1x12x32xf32, #tpu.memory_space<vmem>>, vector<1x2x32xf32>
    tpu.vector_store %arg5[%c0_7, %c10, %c0_8], %8 {strides = array<i32>} : memref<1x12x32xf32, #tpu.memory_space<vmem>>, vector<1x2x32xf32>,
    %c0_9 = arith.constant 0 : index
    %c0_10 = arith.constant 0 : index
    %c0_11 = arith.constant 0 : index
    %10 = vector.load %arg5[%c0_9, %c0_10, %c0_11] : memref<1x12x32xf32, #tpu.memory_space<vmem>>, vector<1x12x32xf32>
    %11 = vector.extract_strided_slice %10 {offsets = [0, 0, 0], sizes = [1, 8, 32], strides = [1, 1, 1]} : vector<1x12x32xf32> to vector<1x8x32xf32>
    %12 = vector.extract_strided_slice %10 {offsets = [0, 1, 0], sizes = [1, 8, 32], strides = [1, 1, 1]} : vector<1x12x32xf32> to vector<1x8x32xf32>
    %13 = vector.extract_strided_slice %10 {offsets = [0, 2, 0], sizes = [1, 8, 32], strides = [1, 1, 1]} : vector<1x12x32xf32> to vector<1x8x32xf32>
    %14 = vector.extract_strided_slice %10 {offsets = [0, 3, 0], sizes = [1, 8, 32], strides = [1, 1, 1]} : vector<1x12x32xf32> to vector<1x8x32xf32>
    %15 = vector.extract_strided_slice %10 {offsets = [0, 4, 0], sizes = [1, 8, 32], strides = [1, 1, 1]} : vector<1x12x32xf32> to vector<1x8x32xf32>
    %16 = arith.addf %11, %12 : vector<1x8x32xf32>
    %17 = arith.addf %13, %14 : vector<1x8x32xf32>
    %18 = arith.addf %16, %17 : vector<1x8x32xf32>
    %19 = arith.addf %18, %15 : vector<1x8x32xf32>
    %cst = arith.constant 2.000000e-01 : f32
    %20 = vector.broadcast %cst : f32 to vector<1x8x32xf32>
    %21 = arith.mulf %19, %20 : vector<1x8x32xf32>
    %c0_12 = arith.constant 0 : index
    %c0_13 = arith.constant 0 : index
    %c0_14 = arith.constant 0 : index
    %22 = vector.load %arg4[%c0_12, %c0_13, %c0_14] : memref<1x8x32xf32, #tpu.memory_space<vmem>>, vector<1x8x32xf32>
    tpu.vector_store %arg4[%c0_12, %c0_13, %c0_14], %21 {strides = array<i32>} : memref<1x8x32xf32, #tpu.memory_space<vmem>>, vector<1x8x32xf32>,
    %23 = arith.subf %0, %21 : vector<1x8x32xf32>
    %c0_15 = arith.constant 0 : index
    %c0_16 = arith.constant 0 : index
    %c0_17 = arith.constant 0 : index
    %24 = vector.load %arg3[%c0_15, %c0_16, %c0_17] : memref<1x8x32xf32, #tpu.memory_space<vmem>>, vector<1x8x32xf32>
    tpu.vector_store %arg3[%c0_15, %c0_16, %c0_17], %23 {strides = array<i32>} : memref<1x8x32xf32, #tpu.memory_space<vmem>>, vector<1x8x32xf32>,
    return
  }
  func.func @transform_0(%arg0: i32, %arg1: i32) -> (i32, i32, i32) {
    %c0_i32 = arith.constant 0 : i32
    %c0_i32_0 = arith.constant 0 : i32
    return %arg0, %c0_i32, %arg1 : i32, i32, i32
  }
  func.func @transform_1(%arg0: i32, %arg1: i32) -> (i32, i32, i32) {
    %c0_i32 = arith.constant 0 : i32
    %c0_i32_0 = arith.constant 0 : i32
    return %arg0, %c0_i32, %arg1 : i32, i32, i32
  }
  func.func @transform_2(%arg0: i32, %arg1: i32) -> (i32, i32, i32) {
    %c0_i32 = arith.constant 0 : i32
    %c0_i32_0 = arith.constant 0 : i32
    return %arg0, %c0_i32, %arg1 : i32, i32, i32
  }
}

</mosaic_0001>

<bundles_post_ra>
// kernel: tpu_custom_call.1
= control target key start
LH: loop header
LB: loop body
LE: loop exit
PB: predicated region body
PF: predicated region fallthrough
CT: control target
= control target key end

     0   :  { %8 = vsyncpa [#allocation4], 0  ;;  %s778_s0 = inlined_call_operand.hbm [shape: f32[2,8,32], index: 0, kind: input, shape index: {}]   ;;  %s779_s1 = inlined_call_operand.hbm [shape: f32[2,8,32], index: 1, kind: output, shape index: {0}]   ;;  %s780_s2 = inlined_call_operand.hbm [shape: f32[2,8,32], index: 2, kind: output, shape index: {1}]  }
   0x1   :  { %10 = vsyncpa [#allocation4 + $0x1], 0 }
   0x2   :  { %11 = vsyncpa [#allocation5], 0 }
   0x3   :  { %13 = vsyncpa [#allocation5 + $0x1], 0 }
   0x4   :  { %14 = vsyncpa [#allocation8], 0 }
   0x5   :  { %16 = vsyncpa [#allocation8 + $0x1], 0  ;;  %s624_s9 = smov 0   ;;  %s626_s10 = smov 0  }
   0x6   :  { %s628_s11 = smov 0   ;;  %s630_s12 = smov 0  }
   0x7   :  { %s632_s13 = smov 0   ;;  %s634_s14 = smov 0  }
   0x8 LB: > { %s380_s15 = sadd.s32 4294967295, %s607_s14   ;;  %s381_s16 = sadd.s32 4294967294, %s607_s14   ;;  %s607_s14 = sphi %s634_s14, %s22_s14   ;;  %s603_s13 = sphi %s632_s13, %s789_s13   ;;  %s599_s12 = sphi %s630_s12, %s788_s12   ;;  %s595_s11 = sphi %s628_s11, %s787_s11   ;;  %s591_s10 = sphi %s626_s10, %s786_s10   ;;  %s587_s9 = sphi %s624_s9, %s785_s9  }
   0x9   : > { %s34_s17 = sadd.s32 1, %s603_s13  ;;  %s43_s18 = sadd.s32 1, %s595_s11 }
   0xa   : > { %p36_p0 = scmp.ge.s32.totalorder %s34_s17, 2  ;;  %p50_p1 = scmp.ne.s32.totalorder %s595_s11, %s591_s10 }
   0xb   : > { %p51_p2 = scmp.eq.s32.totalorder %s607_s14, 0  ;;  %p56_p3 = scmp.ne.s32.totalorder %s591_s10, %s587_s9 }
   0xc   : > { %s791_s17 = smov (%p36_p0, %s34_s17), 0  ;;  %p57_p5 = scmp.eq.s32.totalorder %s380_s15, 0 }
   0xd   : > { %p665_p4 = por %p51_p2, %p50_p1  ;;  %s38_s20 = ssub.s32 %s603_s13, %s791_s17 }
   0xe   : > { %p82_p6 = scmp.eq.s32.totalorder %s380_s15, 1  ;;  %p41_p7 = scmp.eq.s32.totalorder %s38_s20, 0 }
   0xf   : > { %p671_p8 = por %p57_p5, %p56_p3  ;;  %p88_p10 = scmp.eq.s32.totalorder %s381_s16, 1 }
  0x10   : > { %p675_p9 = por %p82_p6, %p50_p1  ;;  %p383_p12 = scmp.ge.s32.totalorder %s607_s14, 2 }
  0x11   : > { %s680_s23 = scalar_select %p41_p7, %s595_s11, %s43_s18  }
  0x12   : > { %p682_p11 = por %p88_p10, %p56_p3  ;;  %p413_p13 = scmp.lt.s32.totalorder %s607_s14, 2 }
  0x13   : > { %s136_s25 = sand.u32 1, %s595_s11   ;;  %s385_s27 = sshll.u32 %s603_s13, 3 }
  0x14   : > { %s384_s26 = sshll.u32 %s136_s25, 3  ;;  %s145_s30 = scalar_lea.hbm %s778_s0, %s385_s27 }
  0x15   : > { %s140_s3 = scalar_lea.vmem [#allocation3], %s384_s26  ;;  %s147_s5 = sshll.u32 %s145_s30, 4  ;;  %s148_s5 = int_to_ptr.hbm [resolvable:$true] %s147_s5 }
  0x16   : > { %s149_s4 = sshll.u32 %s140_s3, 4  ;;  %p403_p0 = pnand %p413_p13, %p665_p4  ;;  %s150_s4 = int_to_ptr.vmem [resolvable:$true] %s149_s4 }
  0x17   : > { %p386_p1 = scmp.ge.s32.totalorder %s607_s14, 1  ;;  %p154_p2 = scmp.lt.s32.totalorder %s607_s14, 3 }
  0x18   : > { %s137_s6 = scalar_lea.sflag [#allocation4], %s136_s25 }
  0x19   : > { %405 = dma.hbm_to_vmem [thread:$0]  (!%p403_p0), %s148_s5, 128, %s150_s4, %s137_s6  }
  0x1a   : > { %p155_p3 = pnand %p386_p1, %p154_p2 }
  0x1b   : > { %s698_s7 = sand.u32 (!%p155_p3), 1, %s591_s10  }
  0x1c   : > { %158 = sbr.rel (%p155_p3) target bundleno = 75 (0x4b), region = 24  ;;  %s701_s8 = sshll.u32 (!%p155_p3), %s698_s7, 3 }
  0x1d   : > { %s161_s15 = scalar_lea.sflag (!%p155_p3), [#allocation4], %s698_s7  ;;  %s164_s16 = scalar_lea.vmem (!%p155_p3), [#allocation3], %s701_s8 }
  0x21   : > { %574 = dma.done.wait (%p671_p8), %s161_s15, 128  }
  0x22   : > { %576 = vsyncadd (%p671_p8), %s161_s15, 4294967168  ;;  %vm192_vm0 = vcmask 261120   ;;  %v191_v0 = vld [vmem:[%s164_s16] sm:$0xff]  ;;  %vm195_vm1 = vcmask 254976   ;;  %vm203_vm2 = vcmask 1046528   ;;  %s392_s18 = sshll.u32 %s599_s12, 3 }
  0x23   : > { %193 = vst.msk [vmem:[#allocation2 + $0x2] sm:$0xff] %vm192_vm0, %v191_v0  ;;  %v194_v1 = vperm.slane %v191_v0, 0  ;;  %v197_v2 = vperm.slane %v191_v0, 7  ;;  %vm213_vm3 = vcmask 1045504   ;;  %vm219_vm4 = vcmask 1043456   ;;  %s261_s21 = scalar_lea.hbm %s780_s2, %s392_s18  ;;  %s190_s25 = scalar_lea.vmem [#allocation7], %s701_s8 }
  0x24   : > { %s715_s26 = sshll.u32 %s190_s25, 4  ;;  %s246_s12 = scalar_lea.hbm %s779_s1, %s392_s18  ;;  %s264_s26 = int_to_ptr.vmem [resolvable:$true] %s715_s26 }
  0x25   : > { %196 = vst.msk [vmem:[#allocation2] sm:$0x3] %vm195_vm1, %v194_v1  ;;  %s265_s29 = sshll.u32 %s261_s21, 4  ;;  %s183_s30 = scalar_lea.vmem [#allocation6], %s701_s8  ;;  %s266_s29 = int_to_ptr.hbm [resolvable:$true] %s265_s29 }
  0x26   : > { %198 = vst.msk [vmem:[#allocation2 + $0xa] sm:$0x3] %vm195_vm1, %v197_v2  ;;  %s721_s3 = sshll.u32 %s183_s30, 4  ;;  %s250_s4 = sshll.u32 %s246_s12, 4  ;;  %s249_s3 = int_to_ptr.vmem [resolvable:$true] %s721_s3  ;;  %s726_s4 = int_to_ptr.hbm [resolvable:$true] %s250_s4 }
  0x27   : > { %s235_s5 = scalar_lea.sflag [#allocation8], %s698_s7  ;;  %s507_s6 = sshra.s32 %s266_s29, 4  ;;  %s508_s6 = int_to_ptr.hbm [resolvable:$true] %s507_s6 }
  0x28   : > { %s509_s15 = scalar_lea.hbm %s508_s6, 8  ;;  %s513_s18 = scalar_lea.hbm %s780_s2, 16 }
  0x29   : > { %p510_p4 = scmp.ne.s32.totalorder %s508_s6, %s509_s15  ;;  %p514_p7 = scmp.lt.s32.totalorder %s508_s6, %s780_s2 }
  0x2a   : > { %p515_p8 = scmp.lt.s32.totalorder %s513_s18, %s509_s15 }
  0x2b   : > { %p511_p5 = pnand %p510_p4, %p675_p9 }
  0x2c   : > { %v199_v3 = vld [vmem:[#allocation2] sm:$0xff]  ;;  %p516_p10 = por %p515_p8, %p514_p7 }
  0x2d   : > { %v200_v4 = vld [vmem:[#allocation2 + $0x8] sm:$0xf]  ;;  %v204_v5 = vrot.slane %v199_v3, 1  ;;  %v220_v12 = vrot.slane %v199_v3, 4  ;;  %p512_p6 = pneg %p511_p5 }
  0x2e   : > { %v205_v6 = vrot.slane %v200_v4, 1  ;;  %v221_v13 = vrot.slane %v200_v4, 4 }
  0x2f   : > { %p517_p13 = pnand %p516_p10, %p512_p6 }
  0x30   : > { %v206_v7 = vsel %vm203_vm2, %v204_v5, %v205_v6  ;;  %v210_v8 = vadd.f32 %v205_v6, %v200_v4  ;;  %v222_v16 = vsel %vm219_vm4, %v220_v12, %v221_v13 }
  0x31   : > { %v208_v9 = vadd.f32 %v206_v7, %v199_v3 }
  0x32   : > { %v215_v10 = vrot.slane %v210_v8, 2 }
  0x33   : > { %v214_v11 = vrot.slane %v208_v9, 2 }
  0x35   : > { %v216_v14 = vsel %vm213_vm3, %v214_v11, %v215_v10 }
  0x36   : > { %v218_v15 = vadd.f32 %v216_v14, %v208_v9 }
  0x38   : > { %v224_v17 = vadd.f32 %v222_v16, %v218_v15 }
  0x3a   : > { %v225_v18 = vmul.f32 0.2, %v224_v17 }
  0x3c   : > { %226 = vst.msk [vmem:[%s190_s25] sm:$0xff] %vm192_vm0, %v225_v18  ;;  %v227_v19 = vsub.f32 %v191_v0, %v225_v18 }
  0x3d   : > { %520 = shalt.err (!%p517_p13)
}
  0x3e   : > { %399 = dma.vmem_to_hbm [thread:$0]  (%p675_p9), %s264_s26, 128, %s266_s29, %s235_s5   ;;  %228 = vst.msk [vmem:[%s183_s30] sm:$0xff] %vm192_vm0, %v227_v19 }
  0x3f   : > { %s230_s21 = scalar_lea.sflag [#allocation5], %s698_s7  ;;  %s535_s25 = sshra.s32 %s726_s4, 4  ;;  %s536_s25 = int_to_ptr.hbm [resolvable:$true] %s535_s25 }
  0x40   : > { %s537_s27 = scalar_lea.hbm %s536_s25, 8  ;;  %s541_s6 = scalar_lea.hbm %s779_s1, 16 }
  0x41   : > { %p538_p0 = scmp.ne.s32.totalorder %s536_s25, %s537_s27  ;;  %p542_p3 = scmp.lt.s32.totalorder %s536_s25, %s779_s1 }
  0x42   : > { %p543_p4 = scmp.lt.s32.totalorder %s541_s6, %s537_s27 }
  0x43   : > { %p539_p1 = pnand %p538_p0, %p675_p9 }
  0x44   : > { %p544_p5 = por %p543_p4, %p542_p3 }
  0x45   : > { %p540_p2 = pneg %p539_p1 }
  0x47   : > { %p545_p6 = pnand %p544_p5, %p540_p2 }
  0x49   : > { %548 = shalt.err (!%p545_p6)
}
  0x4a   : > { %398 = dma.vmem_to_hbm [thread:$0]  (%p675_p9), %s249_s3, 128, %s726_s4, %s230_s21  }
  0x4b PF: > { %s277_s7 = sand.u32 1, %s587_s9   ;;  %p407_p7 = pnand %p383_p12, %p682_p11 }
  0x4c   : > { %s278_s26 = scalar_lea.sflag [#allocation5], %s277_s7 }
  0x4d   : > { %p408_p8 = pneg %p407_p7 }
  0x4f   : > { %578 = dma.done.wait (%p408_p8), %s278_s26, 128  }
  0x50   : > { %580 = vsyncadd (%p408_p8), %s278_s26, 4294967168  ;;  %s288_s29 = scalar_lea.sflag [#allocation8], %s277_s7 }
  0x51   : > { %582 = dma.done.wait (%p408_p8), %s288_s29, 128  }
  0x52   : > { %584 = vsyncadd (%p408_p8), %s288_s29, 4294967168  ;;  %s22_s14 = sadd.s32 1, %s607_s14   ;;  %s785_s9 = smov %s591_s10 }
  0x53   : > { %p19_p10 = scmp.ge.s32.totalorder %s22_s14, 4   ;;  %s786_s10 = smov %s595_s11 }
  0x54   : > { %s787_s11 = smov %s680_s23  ;;  %s788_s12 = smov %s603_s13 }
  0x55   : > { %s789_s13 = smov %s791_s17  ;;  %21 = sbr.rel (!%p19_p10) target bundleno = 8 (0x8), region = 86 }
  0x5a   :  { %294 = vsyncpa [#allocation4], 1 }
  0x5b   :  { %296 = vsyncpa [#allocation4 + $0x1], 1 }
  0x5c   :  { %297 = vsyncpa [#allocation5], 1 }
  0x5d   :  { %299 = vsyncpa [#allocation5 + $0x1], 1 }
  0x5e   :  { %300 = vsyncpa [#allocation8], 1 }
  0x5f   :  { %302 = vsyncpa [#allocation8 + $0x1], 1 }

</bundles_post_ra>
